<compile_context>
chip_gen: v7x
topology: tpu7x:2x2x1
jax: 0.10.0
libtpu: 0.0.40
codegen_flags: <defaults>
</compile_context>

<pallas_src>
import jax
import jax.numpy as jnp
from jax.experimental import pallas as pl
from jax.experimental.pallas import tpu as pltpu


def act_unit_kernel(kq_ref, w_ref, b1_ref, w2_ref, out_ref):
    # Single MXU push for the whole hidden layer: [k|q] @ W_big.
    m = jnp.dot(kq_ref[...], w_ref[...],
                preferred_element_type=jnp.float32)       # (BB, (D+1)*Hp)

    kq = kq_ref[...].astype(jnp.float32)                  # (BB, 2D)
    D = kq.shape[1] // 2
    Hp = b1_ref.shape[1]

    # h = k@W1k + q@W1q + b1 + sum_i k_i * (q @ W1_outer[i])
    h = m[:, :Hp] + b1_ref[...]
    for i in range(D):  # D is small & static -> unrolled VPU scale-adds
        h = h + kq[:, i:i + 1] * m[:, (i + 1) * Hp:(i + 2) * Hp]

    s = jax.nn.sigmoid(h)                                 # (BB, Hp), EUP

    # linear2 as VPU multiply + lane reduce (w2 zero-padded, so padded lanes
    # contribute exactly 0).  Result stored lane-dense: batch on lanes.
    out = jnp.sum(s * w2_ref[...], axis=-1)               # (BB,)
    out_ref[...] = out[None, :].astype(out_ref.dtype)     # (1, BB)


def _round_up(x, m):
    return (x + m - 1) // m * m


def act_unit_pallas(k, q, w1, b1, w2, b2, *, block_b=512):
    """k, q: (B, D). w1: (D*(D+2), H) (transposed vs torch). w2: (H, 1).
    b1: (H,). b2: (1,). Returns (B, 1) float32."""
    B, D = k.shape
    in_dim, H = w1.shape
    assert in_dim == D * (D + 2)

    f32 = jnp.float32
    Hp = _round_up(H, 128)                                # lane-padded hidden width

    def pad_h(x):                                         # zero-pad last dim H -> Hp
        return jnp.pad(x.astype(f32), ((0, 0), (0, Hp - H)))

    # Split W1 rows according to h1 = concat([k, q, outer_flat]).
    w1k = pad_h(w1[:D])                                   # (D, Hp)
    w1q = pad_h(w1[D:2 * D])                              # (D, Hp)
    w1o = w1[2 * D:].reshape(D, D, H)                     # [i, j] multiplies k_i * q_j
    zeros_dh = jnp.zeros((D, Hp), f32)

    # W_big: (2D, (D+1)*Hp).  Block 0 -> k@W1k + q@W1q; block i+1 -> q@W1o[i]
    # (later scaled by k[:, i] on the VPU inside the kernel).
    blocks = [jnp.concatenate([w1k, w1q], axis=0)]
    for i in range(D):
        blocks.append(jnp.concatenate([zeros_dh, pad_h(w1o[i])], axis=0))
    w_big = jnp.concatenate(blocks, axis=1)               # (2D, (D+1)*Hp)

    b1_row = jnp.pad(b1.astype(f32).reshape(1, H), ((0, 0), (0, Hp - H)))
    w2_row = jnp.pad(w2.astype(f32).reshape(1, H), ((0, 0), (0, Hp - H)))

    # Batch tiling: lane-aligned tile (multiple of 128); pad B to whole tiles.
    BB = _round_up(min(block_b, _round_up(B, 128)), 128)
    B_pad = _round_up(B, BB)
    num_tiles = B_pad // BB

    kq = jnp.concatenate([k, q], axis=1)                  # (B, 2D): one stream/tile
    if B_pad != B:
        kq = jnp.pad(kq, ((0, B_pad - B), (0, 0)))

    nw = (D + 1) * Hp
    cost = pl.CostEstimate(
        flops=2 * B_pad * (2 * D) * nw + 6 * B_pad * Hp,
        transcendentals=B_pad * Hp,                       # sigmoid exps
        bytes_accessed=kq.size * kq.dtype.itemsize + w_big.size * 4 + B_pad * 4,
    )

    out = pl.pallas_call(
        act_unit_kernel,
        out_shape=jax.ShapeDtypeStruct((1, B_pad), jnp.float32),
        grid_spec=pltpu.PrefetchScalarGridSpec(
            num_scalar_prefetch=0,
            grid=(num_tiles,),
            in_specs=[
                pl.BlockSpec((BB, 2 * D), lambda i: (i, 0)),   # [k | q] batch tile
                pl.BlockSpec((2 * D, nw), lambda i: (0, 0)),   # W_big (resident)
                pl.BlockSpec((1, Hp), lambda i: (0, 0)),       # b1 row (resident)
                pl.BlockSpec((1, Hp), lambda i: (0, 0)),       # w2 row (resident)
            ],
            out_specs=pl.BlockSpec((1, BB), lambda i: (0, i)), # lane-dense output
        ),
        compiler_params=pltpu.CompilerParams(
            dimension_semantics=("parallel",)),
        cost_estimate=cost,
    )(kq, w_big, b1_row, w2_row)

    # b2 added wrapper-side (avoids a padded (1,1) VMEM block / DMA per tile).
    return out[0, :B].reshape(B, 1) + b2.astype(jnp.float32)


def act_unit_ref(k, q, w1, b1, w2, b2):
    """Pure-JAX reference mirroring the PyTorch forward exactly."""
    B = k.shape[0]
    outer = jnp.einsum('bi,bj->bij', k, q).reshape(B, -1)
    h1 = jnp.concatenate((k, q, outer), axis=1)
    return jax.nn.sigmoid(h1 @ w1 + b1) @ w2 + b2


if __name__ == "__main__":
    B = 256          # batch: 2 tiles of 128 -> pipelined / TC-shardable grid
    D = 4            # fea_dim
    H = 36           # hidden_dim (module default)
    in_dim = D * (D + 2)

    key = jax.random.PRNGKey(0)
    kk, kq_, kw1, kb1, kw2, kb2 = jax.random.split(key, 6)

    k = jax.random.normal(kk, (B, D), dtype=jnp.float32)
    q = jax.random.normal(kq_, (B, D), dtype=jnp.float32)

    # Deterministic parameter init (PyTorch-Linear-style uniform bounds),
    # stored transposed: W1 (in_dim, H), W2 (H, 1).
    bound1 = 1.0 / (in_dim ** 0.5)
    w1 = jax.random.uniform(kw1, (in_dim, H), jnp.float32, -bound1, bound1)
    b1 = jax.random.uniform(kb1, (H,), jnp.float32, -bound1, bound1)
    bound2 = 1.0 / (H ** 0.5)
    w2 = jax.random.uniform(kw2, (H, 1), jnp.float32, -bound2, bound2)
    b2 = jax.random.uniform(kb2, (1,), jnp.float32, -bound2, bound2)

    out = act_unit_pallas(k, q, w1, b1, w2, b2, block_b=128)
    out = jax.block_until_ready(out)

    ref = act_unit_ref(k, q, w1, b1, w2, b2)
    assert out.shape == (B, 1)
    assert jnp.allclose(out, ref, atol=1e-5, rtol=1e-5), (out, ref)

    print("KERNEL_OK")
</pallas_src>

<mosaic_0001>
module attributes {stable_mosaic.version = 11 : i64} {
  func.func @act_unit_kernel(%arg0: i32, %arg1: memref<128x8xf32, #tpu.memory_space<vmem>>, %arg2: memref<8x640xf32, #tpu.memory_space<vmem>>, %arg3: memref<1x128xf32, #tpu.memory_space<vmem>>, %arg4: memref<1x128xf32, #tpu.memory_space<vmem>>, %arg5: memref<1x128xf32, #tpu.memory_space<vmem>>) attributes {dimension_semantics = [#tpu.dimension_semantics<parallel>], iteration_bounds = array<i64: 2>, scalar_prefetch = 0 : i64, scratch_operands = 0 : i64, tpu.core_type = #tpu.core_type<tc>, window_params = [{transform_indices = @transform_0, window_bounds = array<i64: 128, 8>}, {pipeline_mode = #tpu.pipeline_mode<synchronous>, transform_indices = @transform_1, window_bounds = array<i64: 8, 640>}, {pipeline_mode = #tpu.pipeline_mode<synchronous>, transform_indices = @transform_2, window_bounds = array<i64: 1, 128>}, {pipeline_mode = #tpu.pipeline_mode<synchronous>, transform_indices = @transform_3, window_bounds = array<i64: 1, 128>}, {transform_indices = @transform_4, window_bounds = array<i64: 1, 128>}]} {
    %c0 = arith.constant 0 : index
    %c0_0 = arith.constant 0 : index
    %0 = vector.load %arg1[%c0, %c0_0] : memref<128x8xf32, #tpu.memory_space<vmem>>, vector<128x8xf32>
    %c0_1 = arith.constant 0 : index
    %c0_2 = arith.constant 0 : index
    %1 = vector.load %arg2[%c0_1, %c0_2] : memref<8x640xf32, #tpu.memory_space<vmem>>, vector<8x640xf32>
    %cst = arith.constant dense<0.000000e+00> : vector<128x640xf32>
    %2 = tpu.matmul %0, %1, %cst {dimension_numbers = #tpu.dot_dimension_numbers<[1], [0], [0], [1], [0, 0, 1, 1], [], []>} : vector<128x8xf32>, vector<8x640xf32>, vector<128x640xf32> -> vector<128x640xf32>
    %c0_3 = arith.constant 0 : index
    %c0_4 = arith.constant 0 : index
    %3 = vector.load %arg1[%c0_3, %c0_4] : memref<128x8xf32, #tpu.memory_space<vmem>>, vector<128x8xf32>
    %4 = vector.extract_strided_slice %2 {offsets = [0, 0], sizes = [128, 128], strides = [1, 1]} : vector<128x640xf32> to vector<128x128xf32>
    %c0_5 = arith.constant 0 : index
    %c0_6 = arith.constant 0 : index
    %5 = vector.load %arg3[%c0_5, %c0_6] : memref<1x128xf32, #tpu.memory_space<vmem>>, vector<1x128xf32>
    %6 = vector.broadcast %5 : vector<1x128xf32> to vector<128x128xf32>
    %7 = arith.addf %4, %6 : vector<128x128xf32>
    %8 = vector.extract_strided_slice %3 {offsets = [0, 0], sizes = [128, 1], strides = [1, 1]} : vector<128x8xf32> to vector<128x1xf32>
    %9 = vector.extract_strided_slice %2 {offsets = [0, 128], sizes = [128, 128], strides = [1, 1]} : vector<128x640xf32> to vector<128x128xf32>
    %10 = vector.broadcast %8 : vector<128x1xf32> to vector<128x128xf32>
    %11 = arith.mulf %10, %9 : vector<128x128xf32>
    %12 = arith.addf %7, %11 : vector<128x128xf32>
    %13 = vector.extract_strided_slice %3 {offsets = [0, 1], sizes = [128, 1], strides = [1, 1]} : vector<128x8xf32> to vector<128x1xf32>
    %14 = vector.extract_strided_slice %2 {offsets = [0, 256], sizes = [128, 128], strides = [1, 1]} : vector<128x640xf32> to vector<128x128xf32>
    %15 = vector.broadcast %13 : vector<128x1xf32> to vector<128x128xf32>
    %16 = arith.mulf %15, %14 : vector<128x128xf32>
    %17 = arith.addf %12, %16 : vector<128x128xf32>
    %18 = vector.extract_strided_slice %3 {offsets = [0, 2], sizes = [128, 1], strides = [1, 1]} : vector<128x8xf32> to vector<128x1xf32>
    %19 = vector.extract_strided_slice %2 {offsets = [0, 384], sizes = [128, 128], strides = [1, 1]} : vector<128x640xf32> to vector<128x128xf32>
    %20 = vector.broadcast %18 : vector<128x1xf32> to vector<128x128xf32>
    %21 = arith.mulf %20, %19 : vector<128x128xf32>
    %22 = arith.addf %17, %21 : vector<128x128xf32>
    %23 = vector.extract_strided_slice %3 {offsets = [0, 3], sizes = [128, 1], strides = [1, 1]} : vector<128x8xf32> to vector<128x1xf32>
    %24 = vector.extract_strided_slice %2 {offsets = [0, 512], sizes = [128, 128], strides = [1, 1]} : vector<128x640xf32> to vector<128x128xf32>
    %25 = vector.broadcast %23 : vector<128x1xf32> to vector<128x128xf32>
    %26 = arith.mulf %25, %24 : vector<128x128xf32>
    %27 = arith.addf %22, %26 : vector<128x128xf32>
    %28 = arith.negf %27 : vector<128x128xf32>
    %29 = math.exp %28 : vector<128x128xf32>
    %cst_7 = arith.constant 1.000000e+00 : f32
    %30 = vector.broadcast %cst_7 : f32 to vector<128x128xf32>
    %31 = arith.addf %30, %29 : vector<128x128xf32>
    %32 = arith.divf %30, %31 : vector<128x128xf32>
    %c0_8 = arith.constant 0 : index
    %c0_9 = arith.constant 0 : index
    %33 = vector.load %arg4[%c0_8, %c0_9] : memref<1x128xf32, #tpu.memory_space<vmem>>, vector<1x128xf32>
    %34 = vector.broadcast %33 : vector<1x128xf32> to vector<128x128xf32>
    %35 = arith.mulf %32, %34 : vector<128x128xf32>
    %cst_10 = arith.constant dense<0.000000e+00> : vector<128xf32>
    %36 = vector.multi_reduction <add>, %35, %cst_10 [1] : vector<128x128xf32> to vector<128xf32>
    %37 = vector.shape_cast %36 : vector<128xf32> to vector<1x128xf32>
    %c0_11 = arith.constant 0 : index
    %c0_12 = arith.constant 0 : index
    %38 = vector.load %arg5[%c0_11, %c0_12] : memref<1x128xf32, #tpu.memory_space<vmem>>, vector<1x128xf32>
    tpu.vector_store %arg5[%c0_11, %c0_12], %37 {strides = array<i32>} : memref<1x128xf32, #tpu.memory_space<vmem>>, vector<1x128xf32>,
    return
  }
  func.func @transform_0(%arg0: i32) -> (i32, i32) {
    %c0_i32 = arith.constant 0 : i32
    %c0_i32_0 = arith.constant 0 : i32
    return %arg0, %c0_i32 : i32, i32
  }
  func.func @transform_1(%arg0: i32) -> (i32, i32) {
    %c0_i32 = arith.constant 0 : i32
    %c0_i32_0 = arith.constant 0 : i32
    %c0_i32_1 = arith.constant 0 : i32
    return %c0_i32, %c0_i32_0 : i32, i32
  }
  func.func @transform_2(%arg0: i32) -> (i32, i32) {
    %c0_i32 = arith.constant 0 : i32
    %c0_i32_0 = arith.constant 0 : i32
    %c0_i32_1 = arith.constant 0 : i32
    return %c0_i32, %c0_i32_0 : i32, i32
  }
  func.func @transform_3(%arg0: i32) -> (i32, i32) {
    %c0_i32 = arith.constant 0 : i32
    %c0_i32_0 = arith.constant 0 : i32
    %c0_i32_1 = arith.constant 0 : i32
    return %c0_i32, %c0_i32_0 : i32, i32
  }
  func.func @transform_4(%arg0: i32) -> (i32, i32) {
    %c0_i32 = arith.constant 0 : i32
    %c0_i32_0 = arith.constant 0 : i32
    return %c0_i32, %arg0 : i32, i32
  }
}

</mosaic_0001>

<bundles_post_ra>
// kernel: tpu_custom_call.1
= control target key start
LH: loop header
LB: loop body
LE: loop exit
PB: predicated region body
PF: predicated region fallthrough
CT: control target
= control target key end

     0   :  { %9 = vsyncpa [#allocation3], 0  ;;  %s2470_s0 = inlined_call_operand.vmem [shape: f32[256,8], index: 0, kind: input, shape index: {}]   ;;  %s2471_s1 = inlined_call_operand.vmem [shape: f32[8,640], index: 1, kind: input, shape index: {}]   ;;  %s2472_s2 = inlined_call_operand.vmem [shape: f32[1,128], index: 2, kind: input, shape index: {}]   ;;  %s2473_s3 = inlined_call_operand.vmem [shape: f32[1,128], index: 3, kind: input, shape index: {}]   ;;  %s2474_s4 = inlined_call_operand.hbm [shape: f32[1,256], index: 4, kind: output, shape index: {}]  }
   0x1   :  { %11 = vsyncpa [#allocation3 + $0x1], 0  ;;  %s1832_s15 = smov 0   ;;  %s1834_s16 = smov 0  }
   0x2   :  { %s1836_s17 = smov 0   ;;  %s1838_s18 = smov 0  }
   0x3 LB: > { %s1488_s19 = sadd.s32 4294967295, %s1799_s18   ;;  %s1489_s20 = sadd.s32 4294967294, %s1799_s18   ;;  %s1799_s18 = sphi %s1838_s18, %s2480_s18   ;;  %s1795_s17 = sphi %s1836_s17, %s2479_s17   ;;  %s1791_s16 = sphi %s1834_s16, %s2478_s16   ;;  %s1787_s15 = sphi %s1832_s15, %s2477_s15  }
   0x4   : > { %s1855_s21 = sadd.s32 1, %s1799_s18   ;;  %s113_s22 = sadd.s32 1, %s1795_s17 }
   0x5   : > { %s110_s23 = ssub.s32 %s1799_s18, %s1855_s21  ;;  %p123_p0 = scmp.ne.s32.totalorder %s1795_s17, %s1791_s16 }
   0x6   : > { %p111_p1 = scmp.eq.s32.totalorder %s110_s23, 0  ;;  %p124_p2 = scmp.eq.s32.totalorder %s1488_s19, 1 }
   0x7   : > { %p129_p3 = scmp.ne.s32.totalorder %s1791_s16, %s1787_s15  ;;  %p130_p4 = scmp.eq.s32.totalorder %s1489_s20, 1 }
   0x8   : > { %s1865_s24 = scalar_select %p111_p1, %s1795_s17, %s113_s22  }
   0x9   : > { %p1867_p5 = por %p124_p2, %p123_p0  ;;  %p1871_p6 = por %p130_p4, %p129_p3 }
   0xa   : > { %p1492_p7 = scmp.ge.s32.totalorder %s1799_s18, 1  ;;  %p166_p8 = scmp.lt.s32.totalorder %s1799_s18, 3 }
   0xc   : > { %p167_p9 = pnand %p1492_p7, %p166_p8 }
   0xd   : > { %v214_v0 = vld [vmem:[%s2471_s1 + $0x8] sm:$0xff] (!%p167_p9)  ;;  %v213_v1 = vld [vmem:[%s2471_s1] sm:$0xff] (!%p167_p9)  ;;  %s1883_s5 = sshll.u32 (!%p167_p9), %s1488_s19, 4  ;;  %v216_v2 = vld [vmem:[%s2471_s1 + $0x18] sm:$0xff] (!%p167_p9)  ;;  %v1801_v3 = vmov (!%p167_p9), 0   ;;  %v1802_v5 = vmov (!%p167_p9), 0.0  }
   0xe   : > { %170 = sbr.rel (%p167_p9) target bundleno = 510 (0x1fe), region = 36  ;;  %1607 = vmatprep.subr.mxu1 (!%p167_p9), %v214_v0  ;;  %267 = vmatprep.subr.mxu0 (!%p167_p9), %v214_v0  ;;  %p192_p10 = scmp.lt.s32.totalorder (!%p167_p9), %s1883_s5, 31  ;;  %v217_v4 = vld [vmem:[%s2471_s1 + $0x20] sm:$0xff] (!%p167_p9)  ;;  %vm218_vm0 = vcmask (!%p167_p9), 64512   ;;  %v215_v6 = vld [vmem:[%s2471_s1 + $0x10] sm:$0xff] (!%p167_p9)  ;;  %v1803_v23 = vmov (!%p167_p9), 1  }
   0xf   : > { %1608 = vmatpush1.msra.mxu1 (!%p167_p9), %v213_v1  ;;  %1654 = vset.pattern.permute.xlu1 (!%p167_p9), %v1801_v3  ;;  %v1804_v24 = vmov (!%p167_p9), 2   ;;  %v1805_v25 = vmov (!%p167_p9), 3   ;;  %v2220_v61 = vld [vmem:[%s2472_s2] ss:$0 sm:$0xff] (!%p167_p9)  ;;  %vm1319_vm1 = vcmask (!%p167_p9), 130112   ;;  %vm1326_vm2 = vcmask (!%p167_p9), 195712   ;;  %s2428_s9 = scalar_lea.hbm (!%p167_p9), %s2474_s4, %s1883_s5 }
  0x10   : > { %268 = vmatpush1.msra.mxu0 (!%p167_p9), %v213_v1  ;;  %331 = vmatprep.mubr.f32.mxu0 (!%p167_p9), %v1802_v5  ;;  %vm1333_vm3 = vcmask (!%p167_p9), 261312   ;;  %vm1340_vm4 = vcmask (!%p167_p9), 326912   ;;  %vm1347_vm5 = vcmask (!%p167_p9), 392512   ;;  %vm1354_vm6 = vcmask (!%p167_p9), 458112   ;;  %s189_s29 = sand.u32 (!%p167_p9), 1, %s1791_s16   ;;  %s1806_s12 = smov (!%p167_p9), [#allocation2]  }
  0x11   : > { %403 = vmatprep.mubr.f32.mxu1 (!%p167_p9), %v1802_v5  ;;  %428 = vmatprep.subr.mxu1 (!%p167_p9), %v216_v2  ;;  %vm1361_vm7 = vcmask (!%p167_p9), 523712   ;;  %vm1368_vm8 = vcmask (!%p167_p9), 589312   ;;  %vm1375_vm9 = vcmask (!%p167_p9), 654912   ;;  %vm1382_vm10 = vcmask (!%p167_p9), 720512   ;;  %s190_s30 = scalar_lea.vmem (!%p167_p9), [#allocation2], %s189_s29  ;;  %s1741_s13 = sshll.u32 (!%p167_p9), %s1806_s12, 4  ;;  %s1742_s13 = int_to_ptr.vmem [resolvable:$false] %s1741_s13 }
  0x12   : > { %1581 = vmatprep.subr.mxu0 (!%p167_p9), %v217_v4  ;;  %1653 = vset.pattern.permute.xlu0 (!%p167_p9), %v1801_v3  ;;  %vm1389_vm11 = vcmask (!%p167_p9), 786112   ;;  %vm1396_vm12 = vcmask (!%p167_p9), 851712   ;;  %vm1403_vm13 = vcmask (!%p167_p9), 917312   ;;  %vm1410_vm14 = vcmask (!%p167_p9), 982912   ;;  %s1434_s6 = sshll.u32 (!%p167_p9), %s190_s30, 4  ;;  %s2430_s6 = int_to_ptr.vmem [resolvable:$true] %s1434_s6 }
  0x13   : > { %vm1417_vm15 = vcmask (!%p167_p9), 1048512   ;;  %p1744_p0 = scmp.lt.s32.totalorder (!%p167_p9), %s2430_s6, %s1742_s13 }
  0x15   : > { %s193_s10 = scalar_select %p192_p10, %s1883_s5, 31 }
  0x17   : > { %s1494_s11 = sshll.u32 %s193_s10, 3  ;;  %s1422_s10 = scalar_lea.sflag [#allocation3], %s189_s29 }
  0x18   : > { %s1898_s14 = scalar_lea.vmem %s2470_s0, %s1494_s11  ;;  %s1737_s11 = scalar_lea.vmem %s2430_s6, 16 }
  0x19   : > { %v1904_v7 = vld [vmem:[%s1898_s14 + $0x60] sm:$0xff]  ;;  %v1907_v8 = vld [vmem:[%s1898_s14 + $0x10] sm:$0xff]  ;;  %v1918_v10 = vld [vmem:[%s1898_s14 + $0x68] sm:$0xff]  ;;  %p1738_p11 = scmp.ne.s32.totalorder %s2430_s6, %s1737_s11 }
  0x1a   : > { %v1910_v9 = vld [vmem:[%s1898_s14] sm:$0xff]  ;;  %1507 = vmatmul.mubr.msk.f32.vlgmr.msra.gmra.mrb[0].mxu1 %vm218_vm0, %v1904_v7  ;;  %766 = vperm.xlu1 %1654, %v1907_v8   ;;  %v1921_v11 = vld [vmem:[%s1898_s14 + $0x18] sm:$0xff]  ;;  %v1925_v12 = vld [vmem:[%s1898_s14 + $0x8] sm:$0xff] }
  0x1b   : > { %429 = vmatpush1.msra.mxu1 %v215_v6  ;;  %1495 = vmatmul.mubr.msk.f32.vlgmr.msra.gmra.mrb[0].mxu0 %vm218_vm0, %v1910_v9  ;;  %v1936_v13 = vld [vmem:[%s1898_s14 + $0x70] sm:$0xff]  ;;  %v1939_v14 = vld [vmem:[%s1898_s14 + $0x28] sm:$0xff]  ;;  %v1950_v15 = vld [vmem:[%s1898_s14 + $0x78] sm:$0xff]  ;;  %p1739_p12 = pnand %p1738_p11, %p1867_p5 }
  0x1c   : > { %1582 = vmatpush3.msra.mxu0 %v217_v4  ;;  %337 = vmatprep.mubr.f32.mxu0 %v1802_v5  ;;  %v1953_v16 = vld [vmem:[%s1898_s14 + $0x38] sm:$0xff]  ;;  %v1957_v17 = vld [vmem:[%s1898_s14 + $0x20] sm:$0xff]  ;;  %v1967_v18 = vld [vmem:[%s1898_s14 + $0x48] sm:$0xff] }
  0x1d   : > { %409 = vmatprep.mubr.f32.mxu1 %v1802_v5  ;;  %758 = vperm.xlu0 %1653, %v1910_v9   ;;  %v1971_v19 = vld [vmem:[%s1898_s14 + $0x30] sm:$0xff]  ;;  %v1981_v20 = vld [vmem:[%s1898_s14 + $0x58] sm:$0xff]  ;;  %v1985_v21 = vld [vmem:[%s1898_s14 + $0x40] sm:$0xff]  ;;  %p1740_p13 = pneg %p1739_p12 }
  0x1e   : > { %1508 = vmatmul.mubr.msk.f32.gmra.mrb[2].mxu1 %vm218_vm0, %v1918_v10  ;;  %770 = vperm.xlu1 %1654, %v1921_v11   ;;  %v1996_v22 = vld [vmem:[%s1898_s14 + $0x50] sm:$0xff]  ;;  %s1743_s14 = scalar_lea.vmem %s1742_s13, 32 }
  0x1f   : > { %1496 = vmatmul.mubr.msk.f32.gmra.mrb[2].mxu0 %vm218_vm0, %v1925_v12  ;;  %415 = vmatprep.mubr.f32.mxu1 %v1802_v5  ;;  %p1745_p1 = scmp.lt.s32.totalorder %s1743_s14, %s1737_s11 }
  0x20   : > { %343 = vmatprep.mubr.f32.mxu0 %v1802_v5 }
  0x21   : > { %762 = vperm.xlu0 %1653, %v1925_v12   ;;  %p1746_p2 = por %p1745_p1, %p1744_p0 }
  0x22   : > { %1509 = vmatmul.mubr.msk.f32.gmra.mrb[4].mxu1 %vm218_vm0, %v1936_v13  ;;  %778 = vperm.xlu1 %1654, %v1939_v14  }
  0x23   : > { %1497 = vmatmul.mubr.msk.f32.gmra.mrb[4].mxu0 %vm218_vm0, %v1907_v8  ;;  %421 = vmatprep.mubr.f32.mxu1 %v1802_v5  ;;  %p1747_p3 = pnand %p1746_p2, %p1740_p13 }
  0x24   : > { %349 = vmatprep.mubr.f32.mxu0 %v1802_v5 }
  0x25   : > { %774 = vperm.xlu0 %1653, %v1957_v17  }
  0x26   : > { %1510 = vmatmul.mubr.msk.f32.gmra.mrb[6].mxu1 %vm218_vm0, %v1950_v15  ;;  %786 = vperm.xlu1 %1654, %v1953_v16  }
  0x27   : > { %1498 = vmatmul.mubr.msk.f32.gmra.mrb[6].mxu0 %vm218_vm0, %v1921_v11  ;;  %492 = vmatprep.mubr.f32.mxu1 %v1802_v5 }
  0x28   : > { %355 = vmatprep.mubr.f32.mxu0 %v1802_v5 }
  0x29   : > { %782 = vperm.xlu0 %1653, %v1971_v19  }
  0x2a   : > { %794 = vperm.xlu1 %1654, %v1967_v18   ;;  %1511 = vmatmul.mubr.msk.f32.vlgmr.msra.gmra.mrb[8].mxu1 %vm218_vm0, %v1910_v9 }
  0x2b   : > { %1499 = vmatmul.mubr.msk.f32.gmra.mrb[8].mxu0 %vm218_vm0, %v1957_v17  ;;  %498 = vmatprep.mubr.f32.mxu1 %v1802_v5 }
  0x2c   : > { %361 = vmatprep.mubr.f32.mxu0 %v1802_v5 }
  0x2d   : > { %790 = vperm.xlu0 %1653, %v1985_v21  }
  0x2e   : > { %802 = vperm.xlu1 %1654, %v1981_v20   ;;  %1512 = vmatmul.mubr.msk.f32.gmra.mrb[10].mxu1 %vm218_vm0, %v1925_v12 }
  0x2f   : > { %1500 = vmatmul.mubr.msk.f32.gmra.mrb[10].mxu0 %vm218_vm0, %v1939_v14  ;;  %504 = vmatprep.mubr.f32.mxu1 %v1802_v5 }
  0x30   : > { %367 = vmatprep.mubr.f32.mxu0 %v1802_v5 }
  0x31   : > { %798 = vperm.xlu0 %1653, %v1996_v22  }
  0x32   : > { %810 = vperm.xlu1 %1654, %v1918_v10   ;;  %1513 = vmatmul.mubr.msk.f32.gmra.mrb[12].mxu1 %vm218_vm0, %v1907_v8 }
  0x33   : > { %1501 = vmatmul.mubr.msk.f32.gmra.mrb[12].mxu0 %vm218_vm0, %v1971_v19  ;;  %510 = vmatprep.mubr.f32.mxu1 %v1802_v5 }
  0x34   : > { %373 = vmatprep.mubr.f32.mxu0 %v1802_v5 }
  0x35   : > { %806 = vperm.xlu0 %1653, %v1904_v7  }
  0x36   : > { %818 = vperm.xlu1 %1654, %v1950_v15   ;;  %1514 = vmatmul.mubr.msk.f32.gmra.mrb[14].mxu1 %vm218_vm0, %v1921_v11 }
  0x37   : > { %1502 = vmatmul.mubr.msk.f32.gmra.mrb[14].mxu0 %vm218_vm0, %v1953_v16  ;;  %516 = vmatprep.mubr.f32.mxu1 %v1802_v5 }
  0x38   : > { %379 = vmatprep.mubr.f32.mxu0 %v1802_v5 }
  0x39   : > { %814 = vperm.xlu0 %1653, %v1936_v13  }
  0x3a   : > { %1655 = vset.pattern.permute.xlu1 %v1803_v23  ;;  %1515 = vmatmul.mubr.msk.f32.gmra.mrb[16].mxu1 %vm218_vm0, %v1957_v17 }
  0x3b   : > { %1503 = vmatmul.mubr.msk.f32.gmra.mrb[16].mxu0 %vm218_vm0, %v1985_v21  ;;  %858 = vperm.xlu1 %1655, %v1925_v12  }
  0x3c   : > { %385 = vmatprep.mubr.f32.mxu0 %v1802_v5  ;;  %522 = vmatprep.mubr.f32.mxu1 %v1802_v5 }
  0x3d   : > { %1656 = vset.pattern.permute.xlu0 %v1804_v24 }
  0x3e   : > { %1516 = vmatmul.mubr.msk.f32.gmra.mrb[18].mxu1 %vm218_vm0, %v1939_v14  ;;  %950 = vperm.xlu0 %1656, %v1910_v9  }
  0x3f   : > { %1504 = vmatmul.mubr.msk.f32.gmra.mrb[18].mxu0 %vm218_vm0, %v1967_v18  ;;  %862 = vperm.xlu1 %1655, %v1907_v8  }
  0x40   : > { %391 = vmatprep.mubr.f32.mxu0 %v1802_v5  ;;  %528 = vmatprep.mubr.f32.mxu1 %v1802_v5 }
  0x42   : > { %1517 = vmatmul.mubr.msk.f32.gmra.mrb[20].mxu1 %vm218_vm0, %v1971_v19  ;;  %962 = vperm.xlu0 %1656, %v1921_v11  }
  0x43   : > { %1505 = vmatmul.mubr.msk.f32.gmra.mrb[20].mxu0 %vm218_vm0, %v1996_v22  ;;  %870 = vperm.xlu1 %1655, %v1957_v17  }
  0x44   : > { %397 = vmatprep.mubr.f32.mxu0 %v1802_v5  ;;  %534 = vmatprep.mubr.f32.mxu1 %v1802_v5 }
  0x46   : > { %1518 = vmatmul.mubr.msk.f32.gmra.mrb[22].mxu1 %vm218_vm0, %v1953_v16  ;;  %970 = vperm.xlu0 %1656, %v1939_v14  }
  0x47   : > { %1506 = vmatmul.mubr.msk.f32.gmra.mrb[22].mxu0 %vm218_vm0, %v1981_v20  ;;  %878 = vperm.xlu1 %1655, %v1971_v19  }
  0x48   : > { %540 = vmatprep.mubr.f32.mxu1 %v1802_v5  ;;  %1583 = vmatprep.mubr.msk.f32.mxu0 %vm218_vm0, %v1910_v9 }
  0x4a   : > { %1519 = vmatmul.mubr.msk.f32.gmra.mrb[24].mxu1 %vm218_vm0, %v1985_v21  ;;  %982 = vperm.xlu0 %1656, %v1985_v21  }
  0x4b   : > { %1584 = vmatmul.mubr.msk.f32.vlgmr.msra.gmra.mrb[24].mxu0 %vm218_vm0, %v1925_v12  ;;  %886 = vperm.xlu1 %1655, %v1985_v21  }
  0x4c   : > { %546 = vmatprep.mubr.f32.mxu1 %v1802_v5  ;;  %1586 = vmatprep.mubr.msk.f32.mxu0 %vm218_vm0, %v1907_v8 }
  0x4e   : > { %1520 = vmatmul.mubr.msk.f32.gmra.mrb[26].mxu1 %vm218_vm0, %v1967_v18  ;;  %1663 = vset.pattern.permute.xlu0 %v1803_v23 }
  0x4f   : > { %1587 = vmatmul.mubr.msk.f32.gmra.mrb[26].mxu0 %vm218_vm0, %v1921_v11  ;;  %894 = vperm.xlu1 %1655, %v1996_v22  }
  0x50   : > { %552 = vmatprep.mubr.f32.mxu1 %v1802_v5  ;;  %1589 = vmatprep.mubr.msk.f32.mxu0 %vm218_vm0, %v1957_v17 }
  0x51   : > { %854 = vperm.xlu0 %1663, %v1910_v9  }
  0x52   : > { %1521 = vmatmul.mubr.msk.f32.gmra.mrb[28].mxu1 %vm218_vm0, %v1996_v22 }
  0x53   : > { %1590 = vmatmul.mubr.msk.f32.gmra.mrb[28].mxu0 %vm218_vm0, %v1939_v14  ;;  %902 = vperm.xlu1 %1655, %v1904_v7  }
  0x54   : > { %558 = vmatprep.mubr.f32.mxu1 %v1802_v5  ;;  %1592 = vmatprep.mubr.msk.f32.mxu0 %vm218_vm0, %v1971_v19 }
  0x55   : > { %866 = vperm.xlu0 %1663, %v1921_v11  }
  0x56   : > { %1522 = vmatmul.mubr.msk.f32.gmra.mrb[30].mxu1 %vm218_vm0, %v1981_v20 }
  0x57   : > { %1593 = vmatmul.mubr.msk.f32.gmra.mrb[30].mxu0 %vm218_vm0, %v1953_v16  ;;  %1657 = vset.pattern.permute.xlu1 %v1804_v24 }
  0x58   : > { %954 = vperm.xlu1 %1657, %v1925_v12   ;;  %564 = vmatprep.mubr.f32.mxu1 %v1802_v5 }
  0x59   : > { %1595 = vmatprep.mubr.msk.f32.mxu0 %vm218_vm0, %v1985_v21  ;;  %874 = vperm.xlu0 %1663, %v1939_v14  }
  0x5a   : > { %1523 = vmatmul.mubr.msk.f32.gmra.mrb[32].mxu1 %vm218_vm0, %v1904_v7 }
  0x5b   : > { %1596 = vmatmul.mubr.msk.f32.gmra.mrb[32].mxu0 %vm218_vm0, %v1967_v18  ;;  %570 = vmatprep.mubr.f32.mxu1 %v1802_v5 }
  0x5c   : > { %958 = vperm.xlu1 %1657, %v1907_v8   ;;  %1598 = vmatprep.mubr.msk.f32.mxu0 %vm218_vm0, %v1996_v22 }
  0x5d   : > { %882 = vperm.xlu0 %1663, %v1953_v16  }
  0x5e   : > { %1524 = vmatmul.mubr.msk.f32.gmra.mrb[34].mxu1 %vm218_vm0, %v1918_v10 }
  0x5f   : > { %1599 = vmatmul.mubr.msk.f32.gmra.mrb[34].mxu0 %vm218_vm0, %v1981_v20  ;;  %576 = vmatprep.mubr.f32.mxu1 %v1802_v5 }
  0x60   : > { %1658 = vset.pattern.permute.xlu1 %v1805_v25  ;;  %1601 = vmatprep.mubr.msk.f32.mxu0 %vm218_vm0, %v1904_v7 }
  0x61   : > { %1046 = vperm.xlu1 %1658, %v1910_v9   ;;  %890 = vperm.xlu0 %1663, %v1967_v18  }
  0x62   : > { %1525 = vmatmul.mubr.msk.f32.gmra.mrb[36].mxu1 %vm218_vm0, %v1936_v13 }
  0x63   : > { %1602 = vmatmul.mubr.msk.f32.gmra.mrb[36].mxu0 %vm218_vm0, %v1918_v10  ;;  %582 = vmatprep.mubr.f32.mxu1 %v1802_v5 }
  0x64   : > { %1604 = vmatprep.mubr.msk.f32.mxu0 %vm218_vm0, %v1936_v13 }
  0x65   : > { %1659 = vset.pattern.permute.xlu1 %v1804_v24  ;;  %898 = vperm.xlu0 %1663, %v1981_v20  }
  0x66   : > { %966 = vperm.xlu1 %1659, %v1957_v17   ;;  %1526 = vmatmul.mubr.msk.f32.gmra.mrb[38].mxu1 %vm218_vm0, %v1950_v15 }
  0x67   : > { %1605 = vmatmul.mubr.msk.f32.gmra.mrb[38].mxu0 %vm218_vm0, %v1950_v15 }
  0x69   : > { %906 = vperm.xlu0 %1663, %v1918_v10  }
  0x6a   : > { %1660 = vset.pattern.permute.xlu1 %v1805_v25 }
  0x6b   : > { %1054 = vperm.xlu1 %1660, %v1907_v8  }
  0x6d   : > { %910 = vperm.xlu0 %1663, %v1936_v13  }
  0x6f   : > { %1058 = vperm.xlu1 %1660, %v1921_v11  }
  0x71   : > { %1668 = vset.pattern.permute.xlu0 %v1805_v25 }
  0x72   : > { %1050 = vperm.xlu0 %1668, %v1925_v12  }
  0x73   : > { %1661 = vset.pattern.permute.xlu1 %v1804_v24 }
  0x74   : > { %974 = vperm.xlu1 %1661, %v1971_v19  }
  0x76   : > { %1062 = vperm.xlu0 %1668, %v1957_v17  }
  0x78   : > { %978 = vperm.xlu1 %1661, %v1953_v16  }
  0x7a   : > { %1074 = vperm.xlu0 %1668, %v1953_v16  }
  0x7c   : > { %1662 = vset.pattern.permute.xlu1 %v1805_v25 }
  0x7d   : > { %1066 = vperm.xlu1 %1662, %v1939_v14  }
  0x7e   : > { %1086 = vperm.xlu0 %1668, %v1996_v22  }
  0x81   : > { %1070 = vperm.xlu1 %1662, %v1971_v19  }
  0x82   : > { %1090 = vperm.xlu0 %1668, %v1981_v20  }
  0x85   : > { %1664 = vset.pattern.permute.xlu1 %v1804_v24 }
  0x86   : > { %986 = vperm.xlu1 %1664, %v1967_v18   ;;  %1094 = vperm.xlu0 %1668, %v1904_v7  }
  0x8a   : > { %990 = vperm.xlu1 %1664, %v1996_v22   ;;  %1098 = vperm.xlu0 %1668, %v1918_v10  }
  0x8e   : > { %1665 = vset.pattern.permute.xlu1 %v1805_v25  ;;  %1106 = vperm.xlu0 %1668, %v1950_v15  }
  0x8f   : > { %1078 = vperm.xlu1 %1665, %v1985_v21  }
  0x93   : > { %1666 = vset.pattern.permute.xlu1 %v1804_v24 }
  0x94   : > { %994 = vperm.xlu1 %1666, %v1981_v20  }
  0x98   : > { %1667 = vset.pattern.permute.xlu1 %v1805_v25 }
  0x99   : > { %v2148_v26 = vpop.permute.xlu1 %766  ;;  %1082 = vperm.xlu1 %1667, %v1967_v18  }
  0x9c   : > { %v759_v27 = vpop.permute.xlu0 %758 }
  0x9d   : > { %v2151_v28 = vpop.permute.xlu1 %770  ;;  %1669 = vset.pattern.permute.xlu1 %v1804_v24 }
  0x9e   : > { %998 = vperm.xlu1 %1669, %v1904_v7  }
  0xa0   : > { %v763_v29 = vpop.permute.xlu0 %762 }
  0xa1   : > { %v2155_v30 = vpop.permute.xlu1 %778 }
  0xa2   : > { %1670 = vset.pattern.permute.xlu1 %v1803_v23 }
  0xa3   : > { %914 = vperm.xlu1 %1670, %v1950_v15  }
  0xa4   : > { %v2159_v31 = vpop.permute.xlu0 %774 }
  0xa5   : > { %v2161_v32 = vpop.permute.xlu1 %786 }
  0xa7   : > { %1671 = vset.pattern.permute.xlu1 %v1804_v24 }
  0xa8   : > { %1002 = vperm.xlu1 %1671, %v1918_v10   ;;  %v2165_v33 = vpop.permute.xlu0 %782 }
  0xa9   : > { %v2167_v34 = vpop.permute.xlu1 %794 }
  0xac   : > { %1006 = vperm.xlu1 %1671, %v1936_v13   ;;  %v2172_v36 = vpop.permute.xlu0 %790 }
  0xad   : > { %v2170_v35 = vpop.permute.xlu1 %802 }
  0xb0   : > { %1010 = vperm.xlu1 %1671, %v1950_v15   ;;  %v2175_v38 = vpop.permute.xlu0 %798 }
  0xb1   : > { %v811_v37 = vpop.permute.xlu1 %810 }
  0xb4   : > { %1672 = vset.pattern.permute.xlu1 %v1805_v25  ;;  %v807_v40 = vpop.permute.xlu0 %806 }
  0xb5   : > { %v2178_v39 = vpop.permute.xlu1 %818  ;;  %1102 = vperm.xlu1 %1672, %v1936_v13  }
  0xb8   : > { %v815_v43 = vpop.permute.xlu0 %814 }
  0xba   : > { %v2181_v41 = vpop.permute.xlu1 %858 }
  0xbd   : > { %v2187_v45 = vpop.permute.xlu0 %950 }
  0xbe   : > { %v2183_v42 = vpop.permute.xlu1 %862 }
  0xc1   : > { %v2191_v47 = vpop.permute.xlu0 %962 }
  0xc2   : > { %v2185_v44 = vpop.permute.xlu1 %870 }
  0xc5   : > { %v2197_v50 = vpop.permute.xlu0 %970 }
  0xc6   : > { %v2189_v46 = vpop.permute.xlu1 %878 }
  0xc9   : > { %v2201_v52 = vpop.permute.xlu0 %982 }
  0xca   : > { %v2193_v48 = vpop.permute.xlu1 %886 }
  0xce   : > { %v2195_v49 = vpop.permute.xlu1 %894 }
  0xd0   : > { %v855_v54 = vpop.permute.xlu0 %854 }
  0xd2   : > { %v2199_v51 = vpop.permute.xlu1 %902 }
  0xd4   : > { %v2209_v57 = vpop.permute.xlu0 %866 }
  0xd7   : > { %v2203_v53 = vpop.permute.xlu1 %954 }
  0xd8   : > { %v2213_v59 = vpop.permute.xlu0 %874 }
  0xdb   : > { %v2205_v55 = vpop.permute.xlu1 %958 }
  0xdc   : > { %v2222_v63 = vpop.permute.xlu0 %882 }
  0xe0   : > { %v2207_v56 = vpop.permute.xlu1 %1046  ;;  %v2236_v20 = vpop.permute.xlu0 %890 }
  0xe5   : > { %v2211_v58 = vpop.permute.xlu1 %966 }
  0xea   : > { %v2215_v60 = vpop.permute.xlu1 %1054 }
  0xed   : > { %v405_v62 = vpop.f32.mrb[0].mxu1 }
  0xee   : > { %v333_v0 = vpop.f32.mrb[0].mxu0  ;;  %v753_v1 = vadd.f32 %v2220_v61, %v405_v62  ;;  %v407_v2 = vpop.f32.mrb[1].mxu1 }
  0xef   : > { %v741_v3 = vadd.f32 %v2220_v61, %v333_v0  ;;  %v833_v4 = vmul.f32 %v807_v40, %v407_v2  ;;  %v335_v5 = vpop.f32.mrb[1].mxu0  ;;  %v2226_v6 = vpop.permute.xlu1 %1058 }
  0xf0   : > { %v821_v7 = vmul.f32 %v759_v27, %v335_v5 }
  0xf1   : > { %v2228_v8 = vadd.f32 %v833_v4, %v753_v1  ;;  %v411_v9 = vpop.f32.mrb[2].mxu1 }
  0xf2   : > { %v837_v10 = vadd.f32 %v821_v7, %v741_v3  ;;  %v339_v11 = vpop.f32.mrb[2].mxu0  ;;  %v754_v12 = vadd.f32 %v2220_v61, %v411_v9  ;;  %v413_v13 = vpop.f32.mrb[3].mxu1 }
  0xf3   : > { %v742_v14 = vadd.f32 %v2220_v61, %v339_v11  ;;  %v834_v15 = vmul.f32 %v811_v37, %v413_v13  ;;  %v341_v16 = vpop.f32.mrb[3].mxu0  ;;  %v2232_v17 = vpop.permute.xlu1 %974 }
  0xf4   : > { %v822_v18 = vmul.f32 %v763_v29, %v341_v16  ;;  %v2246_v7 = vpop.permute.xlu0 %898 }
  0xf5   : > { %v2234_v19 = vadd.f32 %v834_v15, %v754_v12  ;;  %v417_v21 = vpop.f32.mrb[4].mxu1 }
  0xf6   : > { %v838_v22 = vadd.f32 %v822_v18, %v742_v14  ;;  %v345_v23 = vpop.f32.mrb[4].mxu0  ;;  %v755_v24 = vadd.f32 %v2220_v61, %v417_v21  ;;  %v419_v25 = vpop.f32.mrb[5].mxu1 }
  0xf7   : > { %v743_v27 = vadd.f32 %v2220_v61, %v345_v23  ;;  %v347_v40 = vpop.f32.mrb[5].mxu0  ;;  %v835_v62 = vmul.f32 %v815_v43, %v419_v25  ;;  %v2240_v0 = vpop.permute.xlu1 %978 }
  0xf8   : > { %v823_v37 = vmul.f32 %v2148_v26, %v347_v40 }
  0xf9   : > { %v2243_v1 = vadd.f32 %v835_v62, %v755_v24  ;;  %v423_v29 = vpop.f32.mrb[6].mxu1 }
  0xfa   : > { %v839_v2 = vadd.f32 %v823_v37, %v743_v27  ;;  %v351_v3 = vpop.f32.mrb[6].mxu0  ;;  %v756_v4 = vadd.f32 %v2220_v61, %v423_v29  ;;  %v425_v5 = vpop.f32.mrb[7].mxu1 }
  0xfb   : > { %v744_v9 = vadd.f32 %v2220_v61, %v351_v3  ;;  %v353_v11 = vpop.f32.mrb[7].mxu0  ;;  %v836_v12 = vmul.f32 %v2178_v39, %v425_v5 }
  0xfc   : > { %v824_v43 = vmul.f32 %v2151_v28, %v353_v11  ;;  %v2251_v13 = vpop.permute.xlu1 %1066  ;;  %v2260_v28 = vpop.permute.xlu0 %906 }
  0xfd   : > { %v2253_v26 = vadd.f32 %v836_v12, %v756_v4  ;;  %v494_v14 = vpop.f32.mrb[8].mxu1 }
  0xfe   : > { %v840_v15 = vadd.f32 %v824_v43, %v744_v9  ;;  %v357_v16 = vpop.f32.mrb[8].mxu0  ;;  %v917_v18 = vmul.f32 %v855_v54, %v494_v14  ;;  %v496_v21 = vpop.f32.mrb[9].mxu1 }
  0xff   : > { %v745_v23 = vadd.f32 %v2220_v61, %v357_v16  ;;  %v359_v24 = vpop.f32.mrb[9].mxu0  ;;  %v1013_v25 = vmul.f32 %v2187_v45, %v496_v21 }
 0x100   : > { %v933_v27 = vadd.f32 %v917_v18, %v837_v10  ;;  %v825_v40 = vmul.f32 %v2159_v31, %v359_v24  ;;  %v2258_v39 = vpop.permute.xlu1 %1070 }
 0x101   : > { %v500_v62 = vpop.f32.mrb[10].mxu1 }
 0x102   : > { %v841_v37 = vadd.f32 %v825_v40, %v745_v23  ;;  %v2262_v29 = vadd.f32 %v1013_v25, %v933_v27  ;;  %v363_v3 = vpop.f32.mrb[10].mxu0  ;;  %v918_v54 = vmul.f32 %v2181_v41, %v500_v62  ;;  %v502_v4 = vpop.f32.mrb[11].mxu1 }
 0x103   : > { %v746_v5 = vadd.f32 %v2220_v61, %v363_v3  ;;  %v365_v9 = vpop.f32.mrb[11].mxu0  ;;  %v1014_v45 = vmul.f32 %v2203_v53, %v502_v4  ;;  %v2273_v41 = vpop.permute.xlu0 %910 }
 0x104   : > { %v934_v10 = vadd.f32 %v918_v54, %v838_v22  ;;  %v826_v31 = vmul.f32 %v2155_v30, %v365_v9 }
 0x105   : > { %v506_v11 = vpop.f32.mrb[12].mxu1  ;;  %v2268_v12 = vpop.permute.xlu1 %986 }
 0x106   : > { %v842_v43 = vadd.f32 %v826_v31, %v746_v5  ;;  %v2270_v14 = vadd.f32 %v1014_v45, %v934_v10  ;;  %v369_v16 = vpop.f32.mrb[12].mxu0  ;;  %v919_v18 = vmul.f32 %v2183_v42, %v506_v11  ;;  %v508_v21 = vpop.f32.mrb[13].mxu1 }
 0x107   : > { %v747_v23 = vadd.f32 %v2220_v61, %v369_v16  ;;  %v371_v24 = vpop.f32.mrb[13].mxu0  ;;  %v1015_v53 = vmul.f32 %v2205_v55, %v508_v21 }
 0x108   : > { %v935_v22 = vadd.f32 %v919_v18, %v839_v2  ;;  %v827_v30 = vmul.f32 %v2165_v33, %v371_v24  ;;  %v1051_v2 = vpop.permute.xlu0 %1050 }
 0x109   : > { %v512_v25 = vpop.f32.mrb[14].mxu1  ;;  %v2283_v9 = vpop.permute.xlu1 %990 }
 0x10a   : > { %v843_v27 = vadd.f32 %v827_v30, %v747_v23  ;;  %v2278_v40 = vadd.f32 %v1015_v53, %v935_v22  ;;  %v375_v62 = vpop.f32.mrb[14].mxu0  ;;  %v920_v3 = vmul.f32 %v2209_v57, %v512_v25  ;;  %v514_v54 = vpop.f32.mrb[15].mxu1 }
 0x10b   : > { %v748_v42 = vadd.f32 %v2220_v61, %v375_v62  ;;  %v377_v4 = vpop.f32.mrb[15].mxu0  ;;  %v1016_v5 = vmul.f32 %v2191_v47, %v514_v54 }
 0x10c   : > { %v936_v45 = vadd.f32 %v920_v3, %v840_v15  ;;  %v828_v55 = vmul.f32 %v2161_v32, %v377_v4  ;;  %v2302_v4 = vpop.permute.xlu0 %1062 }
 0x10d   : > { %v518_v33 = vpop.f32.mrb[16].mxu1 }
 0x10e   : > { %v844_v10 = vadd.f32 %v828_v55, %v748_v42  ;;  %v2286_v31 = vadd.f32 %v1016_v5, %v936_v45  ;;  %v381_v11 = vpop.f32.mrb[16].mxu0  ;;  %v921_v16 = vmul.f32 %v2185_v44, %v518_v33  ;;  %v520_v57 = vpop.f32.mrb[17].mxu1 }
 0x10f   : > { %v749_v18 = vadd.f32 %v2220_v61, %v381_v11  ;;  %v383_v21 = vpop.f32.mrb[17].mxu0  ;;  %v1017_v23 = vmul.f32 %v2211_v58, %v520_v57  ;;  %v2291_v47 = vpop.permute.xlu1 %1078 }
 0x110   : > { %v937_v24 = vadd.f32 %v921_v16, %v841_v37  ;;  %v829_v15 = vmul.f32 %v2172_v36, %v383_v21 }
 0x111   : > { %v524_v32 = vpop.f32.mrb[18].mxu1 }
 0x112   : > { %v845_v53 = vadd.f32 %v829_v15, %v749_v18  ;;  %v2294_v22 = vadd.f32 %v1017_v23, %v937_v24  ;;  %v387_v30 = vpop.f32.mrb[18].mxu0  ;;  %v922_v25 = vmul.f32 %v2213_v59, %v524_v32  ;;  %v526_v62 = vpop.f32.mrb[19].mxu1 }
 0x113   : > { %v750_v44 = vadd.f32 %v2220_v61, %v387_v30  ;;  %v389_v3 = vpop.f32.mrb[19].mxu0  ;;  %v1018_v54 = vmul.f32 %v2197_v50, %v526_v62  ;;  %v2299_v42 = vpop.permute.xlu1 %994 }
 0x114   : > { %v938_v58 = vadd.f32 %v922_v25, %v842_v43  ;;  %v830_v37 = vmul.f32 %v2167_v34, %v389_v3 }
 0x115   : > { %v530_v36 = vpop.f32.mrb[20].mxu1 }
 0x116   : > { %v846_v5 = vadd.f32 %v830_v37, %v750_v44  ;;  %v2304_v45 = vadd.f32 %v1018_v54, %v938_v58  ;;  %v393_v55 = vpop.f32.mrb[20].mxu0  ;;  %v923_v59 = vmul.f32 %v2189_v46, %v530_v36  ;;  %v532_v33 = vpop.f32.mrb[21].mxu1 }
 0x117   : > { %v751_v11 = vadd.f32 %v2220_v61, %v393_v55  ;;  %v395_v16 = vpop.f32.mrb[21].mxu0  ;;  %v1019_v50 = vmul.f32 %v2232_v17, %v532_v33  ;;  %v1075_v46 = vpop.permute.xlu0 %1074 }
 0x118   : > { %v939_v57 = vadd.f32 %v923_v59, %v843_v27  ;;  %v831_v43 = vmul.f32 %v2175_v38, %v395_v16  ;;  %v2310_v18 = vpop.permute.xlu1 %1082 }
 0x119   : > { %v536_v34 = vpop.f32.mrb[22].mxu1 }
 0x11a   : > { %v847_v21 = vadd.f32 %v831_v43, %v751_v11  ;;  %v2312_v23 = vadd.f32 %v1019_v50, %v939_v57  ;;  %v399_v24 = vpop.f32.mrb[22].mxu0  ;;  %v924_v15 = vmul.f32 %v2222_v63, %v536_v34  ;;  %v538_v32 = vpop.f32.mrb[23].mxu1 }
 0x11b   : > { %v752_v30 = vadd.f32 %v2220_v61, %v399_v24  ;;  %v401_v25 = vpop.f32.mrb[23].mxu0  ;;  %v1020_v62 = vmul.f32 %v2240_v0, %v538_v32  ;;  %v2323_v0 = vpop.permute.xlu0 %1086 }
 0x11c   : > { %v940_v17 = vadd.f32 %v924_v15, %v844_v10  ;;  %v832_v27 = vmul.f32 %v2170_v35, %v401_v25 }
 0x11d   : > { %v542_v38 = vpop.f32.mrb[24].mxu1  ;;  %v2318_v44 = vpop.permute.xlu1 %998 }
 0x11e   : > { %v848_v3 = vadd.f32 %v832_v27, %v752_v30  ;;  %v1036_v54 = vadd.f32 %v1020_v62, %v940_v17  ;;  %v925_v58 = vmul.f32 %v2193_v48, %v542_v38  ;;  %v1585_v37 = vpop.f32.mrb[24].mxu0  ;;  %v544_v36 = vpop.f32.mrb[25].mxu1 }
 0x11f   : > { %v1110_v63 = vmul.f32 %v1585_v37, %v1051_v2  ;;  %v1021_v55 = vmul.f32 %v2201_v52, %v544_v36  ;;  %v655_v59 = vpop.f32.mrb[25].mxu0 }
 0x120   : > { %v941_v61 = vadd.f32 %v925_v58, %v845_v53  ;;  %v1109_v33 = vmul.f32 %v2207_v56, %v655_v59 }
 0x121   : > { %v1126_v35 = vadd.f32 %v1110_v63, %v2270_v14  ;;  %v548_v10 = vpop.f32.mrb[26].mxu1 }
 0x122   : > { %v2326_v11 = vadd.f32 %v1021_v55, %v941_v61  ;;  %v1125_v16 = vadd.f32 %v1109_v33, %v2262_v29  ;;  %v926_v48 = vmul.f32 %v2236_v20, %v548_v10  ;;  %v1588_v50 = vpop.f32.mrb[26].mxu0  ;;  %v550_v57 = vpop.f32.mrb[27].mxu1 }
 0x123   : > { %v1545_v2 = vmul.f32 -1.442695, %v1126_v35  ;;  %v1112_v52 = vmul.f32 %v1588_v50, %v2226_v6  ;;  %v1022_v53 = vmul.f32 %v2268_v12, %v550_v57  ;;  %v665_v43 = vpop.f32.mrb[27].mxu0  ;;  %v2332_v56 = vpop.permute.xlu1 %914 }
 0x124   : > { %v1544_v34 = vmul.f32 -1.442695, %v1125_v16  ;;  %v942_v24 = vadd.f32 %v926_v48, %v846_v5  ;;  %v1111_v14 = vmul.f32 %v2215_v60, %v665_v43  ;;  %v1091_v12 = vpop.permute.xlu0 %1090 }
 0x125   : > { %1673 = vpow2.f32 %v1545_v2  ;;  %v1128_v15 = vadd.f32 %v1112_v52, %v2286_v31  ;;  %v554_v29 = vpop.f32.mrb[28].mxu1 }
 0x126   : > { %1675 = vpow2.f32 %v1544_v34  ;;  %v1038_v20 = vadd.f32 %v1022_v53, %v942_v24  ;;  %v1127_v32 = vadd.f32 %v1111_v14, %v2278_v40  ;;  %v927_v30 = vmul.f32 %v2195_v49, %v554_v29  ;;  %v1591_v6 = vpop.f32.mrb[28].mxu0  ;;  %v556_v25 = vpop.f32.mrb[29].mxu1 }
 0x127   : > { %v1547_v62 = vmul.f32 -1.442695, %v1128_v15  ;;  %v1114_v17 = vmul.f32 %v1591_v6, %v2251_v13  ;;  %v1023_v5 = vmul.f32 %v2283_v9, %v556_v25  ;;  %v675_v27 = vpop.f32.mrb[29].mxu0  ;;  %v1003_v37 = vpop.permute.xlu1 %1002 }
 0x128   : > { %v1546_v60 = vmul.f32 -1.442695, %v1127_v32  ;;  %v943_v38 = vadd.f32 %v927_v30, %v847_v21  ;;  %v1113_v31 = vmul.f32 %v2302_v4, %v675_v27  ;;  %v2348_v35 = vpop.permute.xlu0 %1094 }
 0x129   : > { %1677 = vpow2.f32 %v1547_v62  ;;  %v1130_v58 = vadd.f32 %v1114_v17, %v2304_v45  ;;  %v560_v40 = vpop.f32.mrb[30].mxu1 }
 0x12a   : > { %1679 = vpow2.f32 %v1546_v60  ;;  %v2342_v49 = vadd.f32 %v1023_v5, %v943_v38  ;;  %v1129_v36 = vadd.f32 %v1113_v31, %v2294_v22  ;;  %v928_v63 = vmul.f32 %v2246_v7, %v560_v40  ;;  %v1594_v13 = vpop.f32.mrb[30].mxu0  ;;  %v562_v55 = vpop.f32.mrb[31].mxu1 }
 0x12b   : > { %v1549_v9 = vmul.f32 -1.442695, %v1130_v58  ;;  %v1116_v59 = vmul.f32 %v1594_v13, %v1075_v46  ;;  %v1024_v21 = vmul.f32 %v2299_v42, %v562_v55  ;;  %v685_v61 = vpop.f32.mrb[31].mxu0  ;;  %v1007_v2 = vpop.permute.xlu1 %1006 }
 0x12c   : > { %v1548_v4 = vmul.f32 -1.442695, %v1129_v36  ;;  %v944_v33 = vadd.f32 %v928_v63, %v848_v3  ;;  %v1115_v45 = vmul.f32 %v2258_v39, %v685_v61 }
 0x12d   : > { %1681 = vpow2.f32 %v1549_v9  ;;  %v1132_v10 = vadd.f32 %v1116_v59, %v1036_v54  ;;  %v566_v16 = vpop.f32.mrb[32].mxu1 }
 0x12e   : > { %1683 = vpow2.f32 %v1548_v4  ;;  %v1040_v22 = vadd.f32 %v1024_v21, %v944_v33  ;;  %v1131_v7 = vadd.f32 %v1115_v45, %v2312_v23  ;;  %v929_v48 = vmul.f32 %v2199_v51, %v566_v16  ;;  %v1597_v50 = vpop.f32.mrb[32].mxu0  ;;  %v568_v46 = vpop.f32.mrb[33].mxu1 }
 0x12f   : > { %v1674_v57 = vpop.eup %1673  ;;  %v1551_v42 = vmul.f32 -1.442695, %v1132_v10  ;;  %v1118_v3 = vmul.f32 %v1597_v50, %v2310_v18  ;;  %v1025_v39 = vmul.f32 %v2318_v44, %v568_v46  ;;  %v695_v52 = vpop.f32.mrb[33].mxu0 }
 0x130   : > { %v1676_v53 = vpop.eup %1675  ;;  %v1190_v43 = vadd.f32 1.0, %v1674_v57  ;;  %v1550_v54 = vmul.f32 -1.442695, %v1131_v7  ;;  %v945_v34 = vadd.f32 %v929_v48, %v2228_v8  ;;  %v1117_v24 = vmul.f32 %v2291_v47, %v695_v52  ;;  %v1099_v47 = vpop.permute.xlu0 %1098  ;;  %v2368_v48 = vld [vmem:[%s2473_s3] ss:$0 sm:$0xff] }
 0x131   : > { %v1189_v23 = vadd.f32 1.0, %v1676_v53  ;;  %1685 = vpow2.f32 %v1551_v42  ;;  %v1134_v51 = vadd.f32 %v1118_v3, %v1038_v20  ;;  %v572_v14 = vpop.f32.mrb[34].mxu1 }
 0x132   : > { %1687 = vrcp.f32 %v1190_v43  ;;  %v1041_v15 = vadd.f32 %v1025_v39, %v945_v34  ;;  %v1133_v29 = vadd.f32 %v1117_v24, %v2326_v11  ;;  %v930_v18 = vmul.f32 %v2260_v28, %v572_v14  ;;  %v1600_v32 = vpop.f32.mrb[34].mxu0  ;;  %v574_v44 = vpop.f32.mrb[35].mxu1 }
 0x133   : > { %v1678_v30 = vpop.eup %1677  ;;  %1689 = vrcp.f32 %v1189_v23  ;;  %v1553_v6 = vmul.f32 -1.442695, %v1134_v51  ;;  %v1120_v25 = vmul.f32 %v1600_v32, %v1091_v12  ;;  %v1026_v62 = vmul.f32 %v1003_v37, %v574_v44  ;;  %v705_v8 = vpop.f32.mrb[35].mxu0 }
 0x134   : > { %v1680_v17 = vpop.eup %1679  ;;  %v1192_v5 = vadd.f32 1.0, %v1678_v30  ;;  %1691 = vpow2.f32 %v1550_v54  ;;  %v1552_v20 = vmul.f32 -1.442695, %v1133_v29  ;;  %v946_v27 = vadd.f32 %v930_v18, %v2234_v19  ;;  %v1011_v11 = vpop.permute.xlu1 %1010 }
 0x135   : > { %v1191_v60 = vadd.f32 1.0, %v1680_v17  ;;  %1693 = vpow2.f32 %v1553_v6  ;;  %v1136_v38 = vadd.f32 %v1120_v25, %v1040_v22  ;;  %v1119_v28 = vmul.f32 %v2323_v0, %v705_v8  ;;  %v578_v31 = vpop.f32.mrb[36].mxu1 }
 0x136   : > { %1695 = vrcp.f32 %v1192_v5  ;;  %v1042_v58 = vadd.f32 %v1026_v62, %v946_v27  ;;  %v931_v12 = vmul.f32 %v2273_v41, %v578_v31  ;;  %v1603_v37 = vpop.f32.mrb[36].mxu0  ;;  %v580_v40 = vpop.f32.mrb[37].mxu1 }
 0x137   : > { %v1682_v36 = vpop.eup %1681  ;;  %1697 = vrcp.f32 %v1191_v60  ;;  %v1555_v63 = vmul.f32 -1.442695, %v1136_v38  ;;  %v1135_v13 = vadd.f32 %v1119_v28, %v2342_v49  ;;  %v1122_v55 = vmul.f32 %v1603_v37, %v1099_v47  ;;  %v715_v19 = vpop.f32.mrb[37].mxu0 }
 0x138   : > { %v1684_v9 = vpop.eup %1683  ;;  %v1194_v59 = vadd.f32 1.0, %v1682_v36  ;;  %1699 = vpow2.f32 %v1552_v20  ;;  %v947_v21 = vadd.f32 %v931_v12, %v2243_v1  ;;  %v1027_v0 = vmul.f32 %v1007_v2, %v580_v40  ;;  %v1103_v45 = vpop.permute.xlu1 %1102 }
 0x139   : > { %v1193_v61 = vadd.f32 1.0, %v1684_v9  ;;  %1701 = vpow2.f32 %v1555_v63  ;;  %v1554_v4 = vmul.f32 -1.442695, %v1135_v13  ;;  %v1138_v33 = vadd.f32 %v1122_v55, %v1042_v58  ;;  %v584_v41 = vpop.f32.mrb[38].mxu1  ;;  %v1107_v2 = vpop.permute.xlu0 %1106 }
 0x13a   : > { %1703 = vrcp.f32 %v1194_v59  ;;  %v1043_v10 = vadd.f32 %v1027_v0, %v947_v21  ;;  %v1121_v16 = vmul.f32 %v2348_v35, %v715_v19  ;;  %v932_v49 = vmul.f32 %v2332_v56, %v584_v41  ;;  %v1606_v22 = vpop.f32.mrb[38].mxu0  ;;  %v586_v7 = vpop.f32.mrb[39].mxu1 }
 0x13b   : > { %v1686_v1 = vpop.eup %1685  ;;  %1705 = vrcp.f32 %v1193_v61  ;;  %v1557_v50 = vmul.f32 -1.442695, %v1138_v33  ;;  %v1028_v46 = vmul.f32 %v1011_v11, %v586_v7  ;;  %v725_v57 = vpop.f32.mrb[39].mxu0  ;;  %v1124_v52 = vmul.f32 %v1606_v22, %v1107_v2 }
 0x13c   : > { %v1688_v42 = vpop.eup %1687  ;;  %v1196_v3 = vadd.f32 1.0, %v1686_v1  ;;  %1707 = vpow2.f32 %v1554_v4  ;;  %v1137_v39 = vadd.f32 %v1121_v16, %v1041_v15  ;;  %v948_v35 = vadd.f32 %v932_v49, %v2253_v26 }
 0x13d   : > { %v1690_v56 = vpop.eup %1689  ;;  %1709 = vpow2.f32 %v1557_v50  ;;  %v1123_v53 = vmul.f32 %v1103_v45, %v725_v57  ;;  %v1245_v43 = vmul.f32 %v1688_v42, %v2368_v48  ;;  %v1308_v57 = vlaneseq }
 0x13e   : > { %v1692_v54 = vpop.eup %1691  ;;  %1711 = vrcp.f32 %v1196_v3  ;;  %v1556_v34 = vmul.f32 -1.442695, %v1137_v39  ;;  %v1044_v24 = vadd.f32 %v1028_v46, %v948_v35  ;;  %v1244_v23 = vmul.f32 %v1690_v56, %v2368_v48 }
 0x13f   : > { %v1694_v51 = vpop.eup %1693  ;;  %v1195_v14 = vadd.f32 1.0, %v1692_v54  ;;  %v1139_v29 = vadd.f32 %v1123_v53, %v1043_v10  ;;  %1262 = vadd.xlane.f32.xlu0 %v1245_v43  ;;  %v2387_v42 = vand.u32 127, %v1308_v57  ;;  %v2389_v2 = vshrl.u32 %v1308_v57, 7 }
 0x140   : > { %v1696_v18 = vpop.eup %1695  ;;  %v1198_v15 = vadd.f32 1.0, %v1694_v51  ;;  %1713 = vpow2.f32 %v1556_v34  ;;  %v1140_v26 = vadd.f32 %v1124_v52, %v1044_v24  ;;  %1260 = vadd.xlane.f32.xlu1 %v1244_v23 }
 0x141   : > { %v1698_v32 = vpop.eup %1697  ;;  %1715 = vrcp.f32 %v1195_v14  ;;  %v1558_v44 = vmul.f32 -1.442695, %v1139_v29  ;;  %v1247_v30 = vmul.f32 %v1696_v18, %v2368_v48  ;;  %v1314_v3 = vadd.s32 4294967288, %v2387_v42 }
 0x142   : > { %v1700_v6 = vpop.eup %1699  ;;  %1717 = vrcp.f32 %v1198_v15  ;;  %v1559_v25 = vmul.f32 -1.442695, %v1140_v26  ;;  %v1246_v62 = vmul.f32 %v1698_v32, %v2368_v48  ;;  %v1321_v39 = vadd.s32 4294967280, %v2387_v42 }
 0x143   : > { %v1702_v8 = vpop.eup %1701  ;;  %v1197_v17 = vadd.f32 1.0, %v1700_v6  ;;  %1719 = vpow2.f32 %v1558_v44  ;;  %v1317_v56 = vsub.s32 %v1314_v3, %v2389_v2  ;;  %v1312_v52 = vsub.s32 %v2387_v42, %v2389_v2 }
 0x144   : > { %v1704_v47 = vpop.eup %1703  ;;  %v1200_v5 = vadd.f32 1.0, %v1702_v8  ;;  %1721 = vpow2.f32 %v1559_v25  ;;  %1266 = vadd.xlane.f32.xlu1 %v1247_v30  ;;  %1264 = vadd.xlane.f32.xlu0 %v1246_v62  ;;  %v1324_v43 = vsub.s32 %v1321_v39, %v2389_v2  ;;  %v1335_v54 = vadd.s32 4294967264, %v2387_v42 }
 0x145   : > { %v1706_v20 = vpop.eup %1705  ;;  %1723 = vrcp.f32 %v1197_v17  ;;  %v1249_v27 = vmul.f32 %v1704_v47, %v2368_v48  ;;  %v1342_v29 = vadd.s32 4294967256, %v2387_v42  ;;  %v1349_v26 = vadd.s32 4294967248, %v2387_v42 }
 0x146   : > { %v1708_v60 = vpop.eup %1707  ;;  %1725 = vrcp.f32 %v1200_v5  ;;  %v1248_v11 = vmul.f32 %v1706_v20, %v2368_v48  ;;  %v1338_v15 = vsub.s32 %v1335_v54, %v2389_v2  ;;  %v1356_v62 = vadd.s32 4294967240, %v2387_v42 }
 0x147   : > { %v1710_v38 = vpop.eup %1709  ;;  %v1199_v28 = vadd.f32 1.0, %v1708_v60  ;;  %v1345_v30 = vsub.s32 %v1342_v29, %v2389_v2  ;;  %v1352_v47 = vsub.s32 %v1349_v26, %v2389_v2  ;;  %v1363_v5 = vadd.s32 4294967232, %v2387_v42 }
 0x148   : > { %v1712_v31 = vpop.eup %1711  ;;  %v1202_v58 = vadd.f32 1.0, %v1710_v38  ;;  %1270 = vadd.xlane.f32.xlu1 %v1249_v27  ;;  %1268 = vadd.xlane.f32.xlu0 %v1248_v11  ;;  %v1359_v60 = vsub.s32 %v1356_v62, %v2389_v2  ;;  %v1370_v38 = vadd.s32 4294967224, %v2387_v42 }
 0x149   : > { %1727 = vrcp.f32 %v1199_v28  ;;  %v1251_v12 = vmul.f32 %v1712_v31, %v2368_v48 }
 0x14a   : > { %v1714_v37 = vpop.eup %1713  ;;  %1729 = vrcp.f32 %v1202_v58 }
 0x14b   : > { %v1716_v40 = vpop.eup %1715  ;;  %v1201_v36 = vadd.f32 1.0, %v1714_v37  ;;  %v1377_v37 = vadd.s32 4294967216, %v2387_v42 }
 0x14c   : > { %v1718_v63 = vpop.eup %1717  ;;  %1274 = vadd.xlane.f32.xlu1 %v1251_v12  ;;  %v1250_v13 = vmul.f32 %v1716_v40, %v2368_v48  ;;  %v1366_v12 = vsub.s32 %v1363_v5, %v2389_v2 }
 0x14d   : > { %v1720_v55 = vpop.eup %1719  ;;  %1731 = vrcp.f32 %v1201_v36  ;;  %v1253_v19 = vmul.f32 %v1718_v63, %v2368_v48  ;;  %v1373_v63 = vsub.s32 %v1370_v38, %v2389_v2 }
 0x14e   : > { %v1722_v9 = vpop.eup %1721  ;;  %v1203_v59 = vadd.f32 1.0, %v1720_v55  ;;  %1272 = vadd.xlane.f32.xlu0 %v1250_v13  ;;  %v1384_v55 = vadd.s32 4294967208, %v2387_v42 }
 0x14f   : > { %v1724_v21 = vpop.eup %1723  ;;  %v1204_v0 = vadd.f32 1.0, %v1722_v9 }
 0x150   : > { %v1726_v61 = vpop.eup %1725  ;;  %1733 = vrcp.f32 %v1203_v59  ;;  %1278 = vadd.xlane.f32.xlu1 %v1253_v19  ;;  %v1252_v4 = vmul.f32 %v1724_v21, %v2368_v48  ;;  %v1380_v21 = vsub.s32 %v1377_v37, %v2389_v2 }
 0x151   : > { %1735 = vrcp.f32 %v1204_v0  ;;  %v1255_v33 = vmul.f32 %v1726_v61, %v2368_v48  ;;  %v1391_v0 = vadd.s32 4294967200, %v2387_v42 }
 0x152   : > { %1276 = vadd.xlane.f32.xlu0 %v1252_v4 }
 0x153   : > { %v1728_v41 = vpop.eup %1727 }
 0x154   : > { %v1730_v45 = vpop.eup %1729  ;;  %1282 = vadd.xlane.f32.xlu1 %v1255_v33  ;;  %v1254_v10 = vmul.f32 %v1728_v41, %v2368_v48  ;;  %v1387_v33 = vsub.s32 %v1384_v55, %v2389_v2 }
 0x155   : > { %v1257_v16 = vmul.f32 %v1730_v45, %v2368_v48  ;;  %v1398_v45 = vadd.s32 4294967192, %v2387_v42 }
 0x156   : > { %1280 = vadd.xlane.f32.xlu0 %v1254_v10 }
 0x157   : > { %v1732_v49 = vpop.eup %1731  ;;  %v1401_v57 = vsub.s32 %v1398_v45, %v2389_v2 }
 0x158   : > { %1286 = vadd.xlane.f32.xlu1 %v1257_v16  ;;  %v1256_v22 = vmul.f32 %v1732_v49, %v2368_v48 }
 0x15a   : > { %v1734_v7 = vpop.eup %1733  ;;  %1284 = vadd.xlane.f32.xlu0 %v1256_v22  ;;  %v1394_v22 = vsub.s32 %v1391_v0, %v2389_v2 }
 0x15b   : > { %v1736_v1 = vpop.eup %1735  ;;  %v1258_v50 = vmul.f32 %v1734_v7, %v2368_v48  ;;  %v1405_v7 = vadd.s32 4294967184, %v2387_v42 }
 0x15c   : > { %v1259_v46 = vmul.f32 %v1736_v1, %v2368_v48  ;;  %v1328_v48 = vadd.s32 4294967272, %v2387_v42  ;;  %v1412_v1 = vadd.s32 4294967176, %v2387_v42 }
 0x15e   : > { %1288 = vadd.xlane.f32.xlu0 %v1258_v50  ;;  %1290 = vadd.xlane.f32.xlu1 %v1259_v46  ;;  %v1331_v23 = vsub.s32 %v1328_v48, %v2389_v2 }
 0x1cc   : > { %v1263_v35 = vpop.xlane.xlu0 %1262 }
 0x1cd   : > { %v1261_v53 = vpop.xlane.xlu1 %1260  ;;  %v1318_v34 = vrot.slane %v1263_v35, %v1317_v56 }
 0x1ce   : > { %v1313_v24 = vrot.slane %v1261_v53, %v1312_v52  ;;  %v1408_v52 = vsub.s32 %v1405_v7, %v2389_v2  ;;  %v1415_v53 = vsub.s32 %v1412_v1, %v2389_v2 }
 0x1d0   : > { %v1320_v32 = vsel %vm1319_vm1, %v1318_v34, %v1313_v24 }
 0x1d1   : > { %v1267_v51 = vpop.xlane.xlu1 %1266  ;;  %v1265_v14 = vpop.xlane.xlu0 %1264 }
 0x1d2   : > { %v1325_v18 = vrot.slane %v1265_v14, %v1324_v43  ;;  %v1332_v44 = vrot.slane %v1267_v51, %v1331_v23 }
 0x1d4   : > { %v1327_v8 = vsel %vm1326_vm2, %v1325_v18, %v1320_v32 }
 0x1d5   : > { %v1271_v6 = vpop.xlane.xlu1 %1270  ;;  %v1269_v25 = vpop.xlane.xlu0 %1268  ;;  %v1334_v27 = vsel %vm1333_vm3, %v1332_v44, %v1327_v8 }
 0x1d6   : > { %v1339_v17 = vrot.slane %v1269_v25, %v1338_v15  ;;  %v1346_v20 = vrot.slane %v1271_v6, %v1345_v30 }
 0x1d8   : > { %v1341_v28 = vsel %vm1340_vm4, %v1339_v17, %v1334_v27 }
 0x1d9   : > { %v1275_v11 = vpop.xlane.xlu1 %1274  ;;  %v1348_v36 = vsel %vm1347_vm5, %v1346_v20, %v1341_v28 }
 0x1da   : > { %v1360_v40 = vrot.slane %v1275_v11, %v1359_v60 }
 0x1db   : > { %v1273_v31 = vpop.xlane.xlu0 %1272 }
 0x1dc   : > { %v1353_v58 = vrot.slane %v1273_v31, %v1352_v47 }
 0x1dd   : > { %v1279_v13 = vpop.xlane.xlu1 %1278 }
 0x1de   : > { %v1355_v19 = vsel %vm1354_vm6, %v1353_v58, %v1348_v36  ;;  %v1374_v61 = vrot.slane %v1279_v13, %v1373_v63 }
 0x1df   : > { %v1277_v9 = vpop.xlane.xlu0 %1276  ;;  %v1362_v4 = vsel %vm1361_vm7, %v1360_v40, %v1355_v19 }
 0x1e0   : > { %v1367_v59 = vrot.slane %v1277_v9, %v1366_v12 }
 0x1e1   : > { %v1283_v41 = vpop.xlane.xlu1 %1282 }
 0x1e2   : > { %v1369_v10 = vsel %vm1368_vm8, %v1367_v59, %v1362_v4  ;;  %v1388_v50 = vrot.slane %v1283_v41, %v1387_v33 }
 0x1e3   : > { %v1281_v16 = vpop.xlane.xlu0 %1280  ;;  %v1376_v46 = vsel %vm1375_vm9, %v1374_v61, %v1369_v10 }
 0x1e4   : > { %v1381_v49 = vrot.slane %v1281_v16, %v1380_v21 }
 0x1e5   : > { %v1287_v39 = vpop.xlane.xlu1 %1286 }
 0x1e6   : > { %v1383_v3 = vsel %vm1382_vm10, %v1381_v49, %v1376_v46  ;;  %v1402_v48 = vrot.slane %v1287_v39, %v1401_v57 }
 0x1e7   : > { %v1285_v35 = vpop.xlane.xlu0 %1284  ;;  %v1390_v43 = vsel %vm1389_vm11, %v1388_v50, %v1383_v3 }
 0x1e8   : > { %v1395_v56 = vrot.slane %v1285_v35, %v1394_v22 }
 0x1ea   : > { %v1397_v54 = vsel %vm1396_vm12, %v1395_v56, %v1390_v43 }
 0x1eb   : > { %v1289_v42 = vpop.xlane.xlu0 %1288  ;;  %v1291_v34 = vpop.xlane.xlu1 %1290  ;;  %v1404_v51 = vsel %vm1403_vm13, %v1402_v48, %v1397_v54 }
 0x1ec   : > { %v1409_v24 = vrot.slane %v1289_v42, %v1408_v52  ;;  %v1416_v23 = vrot.slane %v1291_v34, %v1415_v53 }
 0x1ee   : > { %v1411_v14 = vsel %vm1410_vm14, %v1409_v24, %v1404_v51 }
 0x1ef   : > { %v1418_v2 = vsel %vm1417_vm15, %v1416_v23, %v1411_v14 }
 0x1f0   : > { %1420 = vst [vmem:[%s190_s30] sm:$0x1] %v1418_v2 }
 0x1f1   : > { %1750 = shalt.err (!%p1747_p3)
}
 0x1f2   : > { %s1751_s5 = scalar_lea.hbm %s2428_s9, 16  ;;  %s1755_s22 = scalar_lea.hbm %s2474_s4, 32 }
 0x1f3   : > { %p1752_p4 = scmp.ne.s32.totalorder %s2428_s9, %s1751_s5  ;;  %p1756_p9 = scmp.lt.u32.totalorder %s2428_s9, %s2474_s4 }
 0x1f4   : > { %p1757_p10 = scmp.lt.u32.totalorder %s1755_s22, %s1751_s5  ;;  %p1759_p12 = scmp.lt.u32.totalorder %s1751_s5, %s2428_s9 }
 0x1f5   : > { %p1753_p7 = pnand %p1752_p4, %p1867_p5 }
 0x1f6   : > { %p1758_p11 = por %p1757_p10, %p1756_p9 }
 0x1f7   : > { %p1754_p8 = pneg %p1753_p7 }
 0x1f8   : > { %p1760_p13 = por %p1759_p12, %p1758_p11 }
 0x1fa   : > { %p1761_p0 = pnand %p1760_p13, %p1754_p8 }
 0x1fc   : > { %1764 = shalt.err (!%p1761_p0)
}
 0x1fd   : > { %1609 = dma.vmem_to_hbm [thread:$0]  (%p1867_p5), %s2430_s6, 16, %s2428_s9, %s1422_s10  }
 0x1fe PF: > { %p1615_p1 = scmp.ge.s32.totalorder %s1799_s18, 2  ;;  %s1446_s28 = sand.u32 1, %s1787_s15  }
 0x1ff   : > { %s1447_s29 = scalar_lea.sflag [#allocation3], %s1446_s28 }
 0x200   : > { %p1612_p2 = pnand %p1615_p1, %p1871_p6 }
 0x202   : > { %1782 = dma.done.wait (!%p1612_p2), %s1447_s29, 16  }
 0x203   : > { %1784 = vsyncadd (!%p1612_p2), %s1447_s29, 4294967280  ;;  %p14_p3 = scmp.ge.s32.totalorder %s1855_s21, 4   ;;  %s2477_s15 = smov %s1791_s16 }
 0x204   : > { %s2478_s16 = smov %s1795_s17  ;;  %s2479_s17 = smov %s1865_s24 }
 0x205   : > { %s2480_s18 = smov %s1855_s21  ;;  %16 = sbr.rel (!%p14_p3) target bundleno = 3 (0x3), region = 71 }
 0x20c   :  { %1451 = vsyncpa [#allocation3], 1 }
 0x20d   :  { %1453 = vsyncpa [#allocation3 + $0x1], 1 }

</bundles_post_ra>
